<compile_context>
chip_gen: v6e
topology: v6e:2x2x1
jax: 0.10.0
libtpu: 0.0.40
codegen_flags: <defaults>
</compile_context>

<pallas_src>
import functools

import jax
import jax.numpy as jnp
from jax.experimental import pallas as pl
from jax.experimental.pallas import tpu as pltpu


def _decoder_kernel(xr_ref, xt_ref, o_ref, *, col_slice_tn):
    """One (tm, tn) tile of sigmoid(X @ X^T).

    xr_ref: (tm, D)            row tile of X            (compute dtype)
    xt_ref: (D, N) or (D, tn)  X^T (resident or tiled)  (compute dtype)
    o_ref : (tm, tn)           output tile              (output dtype)
    """
    if col_slice_tn is None:
        xt_tile = xt_ref[...]
    else:
        j = pl.program_id(1)
        start = pl.multiple_of(j * col_slice_tn, col_slice_tn)
        xt_tile = xt_ref[:, pl.ds(start, col_slice_tn)]

    rec = jnp.dot(xr_ref[...], xt_tile, preferred_element_type=jnp.float32)
    # sigmoid(x) == 0.5 * tanh(0.5 * x) + 0.5 : a single EUP op per element
    # (vs exp + divide), computed in f32 (safe/fast on v5e too).
    o_ref[...] = (0.5 * jnp.tanh(0.5 * rec) + 0.5).astype(o_ref.dtype)


def _pick_tile(n, preferred=1024):
    """Largest multiple-of-128 tile <= preferred that divides n, else n itself."""
    if n <= preferred or n % 128 != 0:
        return n
    t = (preferred // 128) * 128
    while t >= 128:
        if n % t == 0:
            return t
        t -= 128
    return n


@functools.partial(
    jax.jit,
    static_argnames=(
        "tm", "tn", "compute_dtype", "out_dtype", "max_resident_rhs_bytes"
    ),
)
def inner_product_decoder(
    x,
    *,
    tm=None,
    tn=None,
    compute_dtype=jnp.bfloat16,
    out_dtype=jnp.bfloat16,
    max_resident_rhs_bytes=8 * 1024 * 1024,
):
    """sigmoid(x @ x.T) for x of shape [N, D]  (dropout p=0.0 -> identity)."""
    N, D = x.shape
    tm = _pick_tile(N) if tm is None else tm
    tn = _pick_tile(N) if tn is None else tn
    assert N % tm == 0 and N % tn == 0, "tile sizes must divide N"

    cb = jnp.dtype(compute_dtype).itemsize
    ob = jnp.dtype(out_dtype).itemsize

    # One-time cast + transpose in the wrapper (tiny for small D).
    xr = x.astype(compute_dtype)      # [N, D] row operand
    xt = xr.T                         # [D, N] column operand

    rhs_resident = D * N * cb <= max_resident_rhs_bytes
    if rhs_resident:
        # Whole X^T kept in VMEM for the entire grid.  Constant index_map =>
        # DMA'd from HBM exactly once; single-buffered since it never changes.
        rhs_spec = pl.BlockSpec(
            (D, N),
            lambda i, j: (0, 0),
            pipeline_mode=pl.Buffered(buffer_count=1),
        )
        rhs_vmem = D * N * cb
        col_slice_tn = None if tn == N else tn
    else:
        # v7x-safe fallback: column-tiled RHS, double-buffered by the pipeline.
        rhs_spec = pl.BlockSpec((D, tn), lambda i, j: (0, j))
        rhs_vmem = 2 * D * tn * cb
        col_slice_tn = None

    # Computed VMEM budget: actual buffers + headroom for internal scratch.
    vmem_limit = int(
        rhs_vmem                 # RHS (resident single buffer or 2x tile)
        + 2 * tm * D * cb        # double-buffered row operand
        + 2 * tm * tn * ob       # double-buffered output tile
        + (6 << 20)              # headroom
    )
    vmem_limit = max(16 << 20, min(vmem_limit, 64 << 20))

    grid = (N // tm, N // tn)
    rhs_hbm = (N * D if rhs_resident else (N // tm) * N * D) * cb
    cost = pl.CostEstimate(
        flops=2 * N * N * D,
        transcendentals=N * N,                         # one tanh per element
        bytes_accessed=(N // tn) * N * D * cb + rhs_hbm + N * N * ob,
    )

    kernel = functools.partial(_decoder_kernel, col_slice_tn=col_slice_tn)

    return pl.pallas_call(
        kernel,
        out_shape=jax.ShapeDtypeStruct((N, N), out_dtype),
        grid_spec=pltpu.PrefetchScalarGridSpec(
            num_scalar_prefetch=0,
            grid=grid,
            in_specs=[
                # Row operand: block (i) of X, full feature dim (single K pass).
                pl.BlockSpec((tm, D), lambda i, j: (i, 0)),
                rhs_spec,
            ],
            out_specs=pl.BlockSpec((tm, tn), lambda i, j: (i, j)),
        ),
        compiler_params=pltpu.CompilerParams(
            dimension_semantics=("parallel", "parallel"),
            vmem_limit_bytes=vmem_limit,
        ),
        cost_estimate=cost,
    )(xr, xt)


if __name__ == "__main__":
    key = jax.random.PRNGKey(0)

    def ref_sigmoid_gram(x):
        # Reference with the same bf16 operand rounding the kernel applies.
        xc = x.astype(jnp.bfloat16).astype(jnp.float32)
        return jax.nn.sigmoid(jnp.dot(xc, xc.T))

    # 1) Default path: bf16 output, resident single-buffered X^T, single tile.
    N, D = 256, 64
    x = jax.random.normal(key, (N, D), dtype=jnp.float32)
    ref = ref_sigmoid_gram(x)
    out = jax.block_until_ready(inner_product_decoder(x))
    assert out.shape == (N, N) and out.dtype == jnp.bfloat16
    assert jnp.allclose(out.astype(jnp.float32), ref, atol=1.5e-2), \
        "mismatch (default path)"

    # 2) Multi-tile grid over a resident RHS (in-kernel pl.ds slicing), f32 out.
    N2 = 512
    x2 = jax.random.normal(jax.random.PRNGKey(0), (N2, D), dtype=jnp.float32)
    ref2 = ref_sigmoid_gram(x2)
    out2 = jax.block_until_ready(
        inner_product_decoder(x2, tm=128, tn=128, out_dtype=jnp.float32)
    )
    assert out2.dtype == jnp.float32
    assert jnp.allclose(out2, ref2, atol=1e-3), "mismatch (resident, 128 tiles)"

    # 3) Column-tiled RHS fallback path (forced by a zero resident budget).
    out3 = jax.block_until_ready(
        inner_product_decoder(x2, tm=128, tn=128, max_resident_rhs_bytes=0)
    )
    assert jnp.allclose(out3.astype(jnp.float32), ref2, atol=1.5e-2), \
        "mismatch (column-tiled RHS)"

    print("KERNEL_OK")
</pallas_src>

<mosaic_0001>
module attributes {stable_mosaic.version = 11 : i64} {
  func.func @_decoder_kernel(%arg0: i32, %arg1: i32, %arg2: memref<256x64xbf16, #tpu.memory_space<vmem>>, %arg3: memref<64x256xbf16, #tpu.memory_space<vmem>>, %arg4: memref<256x256xbf16, #tpu.memory_space<vmem>>) attributes {dimension_semantics = [#tpu.dimension_semantics<parallel>, #tpu.dimension_semantics<parallel>], iteration_bounds = array<i64: 1, 1>, scalar_prefetch = 0 : i64, scratch_operands = 0 : i64, tpu.core_type = #tpu.core_type<tc>, window_params = [{transform_indices = @transform_0, window_bounds = array<i64: 256, 64>}, {pipeline_mode = #tpu.pipeline_mode<synchronous>, transform_indices = @transform_1, window_bounds = array<i64: 64, 256>}, {transform_indices = @transform_2, window_bounds = array<i64: 256, 256>}]} {
    %c0 = arith.constant 0 : index
    %c0_0 = arith.constant 0 : index
    %0 = vector.load %arg3[%c0, %c0_0] : memref<64x256xbf16, #tpu.memory_space<vmem>>, vector<64x256xbf16>
    %c0_1 = arith.constant 0 : index
    %c0_2 = arith.constant 0 : index
    %1 = vector.load %arg2[%c0_1, %c0_2] : memref<256x64xbf16, #tpu.memory_space<vmem>>, vector<256x64xbf16>
    %cst = arith.constant dense<0.000000e+00> : vector<256x256xf32>
    %2 = tpu.matmul %1, %0, %cst {dimension_numbers = #tpu.dot_dimension_numbers<[1], [0], [0], [1], [0, 0, 1, 1], [], []>} : vector<256x64xbf16>, vector<64x256xbf16>, vector<256x256xf32> -> vector<256x256xf32>
    %cst_3 = arith.constant 5.000000e-01 : f32
    %3 = vector.broadcast %cst_3 : f32 to vector<256x256xf32>
    %4 = arith.mulf %3, %2 : vector<256x256xf32>
    %5 = math.tanh %4 : vector<256x256xf32>
    %cst_4 = arith.constant 5.000000e-01 : f32
    %6 = vector.broadcast %cst_4 : f32 to vector<256x256xf32>
    %7 = arith.mulf %6, %5 : vector<256x256xf32>
    %cst_5 = arith.constant 5.000000e-01 : f32
    %8 = vector.broadcast %cst_5 : f32 to vector<256x256xf32>
    %9 = arith.addf %7, %8 : vector<256x256xf32>
    %10 = arith.truncf %9 : vector<256x256xf32> to vector<256x256xbf16>
    %c0_6 = arith.constant 0 : index
    %c0_7 = arith.constant 0 : index
    %11 = vector.load %arg4[%c0_6, %c0_7] : memref<256x256xbf16, #tpu.memory_space<vmem>>, vector<256x256xbf16>
    tpu.vector_store %arg4[%c0_6, %c0_7], %10 {strides = array<i32>} : memref<256x256xbf16, #tpu.memory_space<vmem>>, vector<256x256xbf16>,
    return
  }
  func.func @transform_0(%arg0: i32, %arg1: i32) -> (i32, i32) {
    %c0_i32 = arith.constant 0 : i32
    %c0_i32_0 = arith.constant 0 : i32
    return %arg0, %c0_i32 : i32, i32
  }
  func.func @transform_1(%arg0: i32, %arg1: i32) -> (i32, i32) {
    %c0_i32 = arith.constant 0 : i32
    %c0_i32_0 = arith.constant 0 : i32
    %c0_i32_1 = arith.constant 0 : i32
    return %c0_i32, %c0_i32_0 : i32, i32
  }
  func.func @transform_2(%arg0: i32, %arg1: i32) -> (i32, i32) {
    %c0_i32 = arith.constant 0 : i32
    return %arg0, %arg1 : i32, i32
  }
}

</mosaic_0001>

<bundles_post_ra>
// kernel: inner_product_decoder.1
= control target key start
LH: loop header
LB: loop body
LE: loop exit
PB: predicated region body
PF: predicated region fallthrough
CT: control target
= control target key end

     0   :  { %v1205_v2 = vmov 0   ;;  %vm173_vm0 = vcmask 523264   ;;  %s1331_s0 = inlined_call_operand.vmem [shape: bf16[256,64], index: 0, kind: input, shape index: {}]   ;;  %s1332_s1 = inlined_call_operand.vmem [shape: bf16[64,256], index: 1, kind: input, shape index: {}]   ;;  %s1333_s2 = inlined_call_operand.hbm [shape: bf16[256,256], index: 2, kind: output, shape index: {}]  }
   0x1   :  { %v1027_v0 = vld [vmem:[%s1332_s1 + $0x34] ss:$8 sps:$4 sm:$0xff]   ;;  %v1029_v1 = vld [vmem:[%s1332_s1 + $0x30] ss:$8 sps:$4 sm:$0xff]   ;;  %254 = vmatprep.mubr.bf16.mxu0 %v1205_v2  ;;  %334 = vmatprep.mubr.bf16.mxu1 %v1205_v2  ;;  %v1030_v3 = vld [vmem:[%s1332_s1 + $0x24] ss:$8 sps:$4 sm:$0xff]  }
   0x2   :  { %230 = vmatprep.subr.bf16.mxu0 %v1027_v0  ;;  %1015 = vmatprep.subr.bf16.mxu1 %v1027_v0  ;;  %v1032_v4 = vld [vmem:[%s1332_s1 + $0x20] ss:$8 sps:$4 sm:$0xff]   ;;  %v1033_v5 = vld [vmem:[%s1332_s1 + $0x14] ss:$8 sps:$4 sm:$0xff]   ;;  %v1035_v6 = vld [vmem:[%s1332_s1 + $0x10] ss:$8 sps:$4 sm:$0xff]  }
   0x3   :  { %231 = vmatpush1.bf16.msra.mxu0 %v1029_v1  ;;  %1019 = vmatpush1.bf16.msra.mxu1 %v1029_v1  ;;  %v1036_v7 = vld [vmem:[%s1332_s1 + $0x4] ss:$8 sps:$4 sm:$0xff]   ;;  %v1038_v8 = vld [vmem:[%s1332_s1] ss:$8 sps:$4 sm:$0xff]  }
   0x4   :  { %232 = vmatprep.subr.bf16.mxu0 %v1030_v3  ;;  %1016 = vmatprep.subr.bf16.mxu1 %v1030_v3  ;;  %v1039_v9 = vld [vmem:[%s1331_s0] sm:$0xff]  }
   0x5   :  { %v1040_v10 = vld [vmem:[%s1331_s0 + $0x40] sm:$0xff]  }
   0x7   :  { %233 = vmatpush1.bf16.msra.mxu0 %v1032_v4  ;;  %1020 = vmatpush1.bf16.msra.mxu1 %v1032_v4 }
   0x8   :  { %234 = vmatprep.subr.bf16.mxu0 %v1033_v5  ;;  %1017 = vmatprep.subr.bf16.mxu1 %v1033_v5 }
   0xb   :  { %235 = vmatpush1.bf16.msra.mxu0 %v1035_v6  ;;  %1021 = vmatpush1.bf16.msra.mxu1 %v1035_v6 }
   0xc   :  { %236 = vmatprep.subr.bf16.mxu0 %v1036_v7  ;;  %1018 = vmatprep.subr.bf16.mxu1 %v1036_v7 }
   0xf   :  { %237 = vmatpush1.bf16.msra.mxu0 %v1038_v8  ;;  %1022 = vmatpush1.bf16.msra.mxu1 %v1038_v8 }
  0x12   :  { %935 = vmatmul.mubr.msk.bf16.vlgmr.msra.gmra.mxu0 %vm173_vm0, %v1039_v9  ;;  %943 = vmatmul.mubr.msk.bf16.vlgmr.msra.gmra.mxu1 %vm173_vm0, %v1040_v10 }
  0x13   :  { %264 = vmatprep.mubr.bf16.mxu0 %v1205_v2  ;;  %344 = vmatprep.mubr.bf16.mxu1 %v1205_v2 }
  0x14   :  { %7 = vsyncpa [#allocation3], 0  ;;  %v1041_v11 = vld [vmem:[%s1331_s0 + $0x8] sm:$0xff]   ;;  %v1043_v13 = vld [vmem:[%s1331_s0 + $0x10] sm:$0xff]  }
  0x15   :  { %v1042_v12 = vld [vmem:[%s1331_s0 + $0x48] sm:$0xff]   ;;  %v1044_v14 = vld [vmem:[%s1331_s0 + $0x50] sm:$0xff]   ;;  %v1045_v15 = vld [vmem:[%s1331_s0 + $0x18] sm:$0xff]  }
  0x16   :  { %v1046_v16 = vld [vmem:[%s1331_s0 + $0x58] sm:$0xff]   ;;  %v1047_v17 = vld [vmem:[%s1331_s0 + $0x20] sm:$0xff]   ;;  %v1049_v19 = vld [vmem:[%s1331_s0 + $0x28] sm:$0xff]  }
  0x17   :  { %v1048_v18 = vld [vmem:[%s1331_s0 + $0x60] sm:$0xff]   ;;  %v1050_v20 = vld [vmem:[%s1331_s0 + $0x68] sm:$0xff]   ;;  %v1051_v21 = vld [vmem:[%s1331_s0 + $0x30] sm:$0xff]  }
  0x18   :  { %v1052_v22 = vld [vmem:[%s1331_s0 + $0x70] sm:$0xff]   ;;  %v1053_v23 = vld [vmem:[%s1331_s0 + $0x38] sm:$0xff]  }
  0x19   :  { %v1054_v24 = vld [vmem:[%s1331_s0 + $0x78] sm:$0xff]   ;;  %s1206_s0 = smov [#allocation2]  }
  0x1a   :  { %936 = vmatmul.mubr.msk.bf16.gmra.mxu0 %vm173_vm0, %v1041_v11  ;;  %944 = vmatmul.mubr.msk.bf16.gmra.mxu1 %vm173_vm0, %v1042_v12  ;;  %s900_s28 = sshll.u32 %s1206_s0, 4  ;;  %s901_s28 = int_to_ptr.vmem [resolvable:$true] %s900_s28 }
  0x1b   :  { %274 = vmatprep.mubr.bf16.mxu0 %v1205_v2  ;;  %354 = vmatprep.mubr.bf16.mxu1 %v1205_v2  ;;  %s1183_s1 = scalar_lea.vmem %s901_s28, 4096  ;;  %p1188_p1 = scmp.lt.s32.totalorder %s901_s28, %s901_s28 }
  0x1c   :  { %p1184_p0 = scmp.ne.s32.totalorder %s901_s28, %s1183_s1  ;;  %p1189_p2 = scmp.lt.s32.totalorder %s1183_s1, %s1183_s1 }
  0x1e   :  { %p1190_p3 = por %p1189_p2, %p1188_p1 }
  0x20   :  { %p1191_p4 = pnand %p1190_p3, %p1184_p0 }
  0x22   :  { %937 = vmatmul.mubr.msk.bf16.gmra.mxu0 %vm173_vm0, %v1043_v13  ;;  %945 = vmatmul.mubr.msk.bf16.gmra.mxu1 %vm173_vm0, %v1044_v14 }
  0x23   :  { %284 = vmatprep.mubr.bf16.mxu0 %v1205_v2  ;;  %364 = vmatprep.mubr.bf16.mxu1 %v1205_v2 }
  0x2a   :  { %938 = vmatmul.mubr.msk.bf16.gmra.mxu0 %vm173_vm0, %v1045_v15  ;;  %946 = vmatmul.mubr.msk.bf16.gmra.mxu1 %vm173_vm0, %v1046_v16 }
  0x2b   :  { %294 = vmatprep.mubr.bf16.mxu0 %v1205_v2  ;;  %374 = vmatprep.mubr.bf16.mxu1 %v1205_v2 }
  0x32   :  { %939 = vmatmul.mubr.msk.bf16.gmra.mxu0 %vm173_vm0, %v1047_v17  ;;  %947 = vmatmul.mubr.msk.bf16.gmra.mxu1 %vm173_vm0, %v1048_v18 }
  0x33   :  { %304 = vmatprep.mubr.bf16.mxu0 %v1205_v2  ;;  %384 = vmatprep.mubr.bf16.mxu1 %v1205_v2 }
  0x3a   :  { %940 = vmatmul.mubr.msk.bf16.gmra.mxu0 %vm173_vm0, %v1049_v19  ;;  %948 = vmatmul.mubr.msk.bf16.gmra.mxu1 %vm173_vm0, %v1050_v20 }
  0x3b   :  { %314 = vmatprep.mubr.bf16.mxu0 %v1205_v2  ;;  %394 = vmatprep.mubr.bf16.mxu1 %v1205_v2 }
  0x42   :  { %941 = vmatmul.mubr.msk.bf16.gmra.mxu0 %vm173_vm0, %v1051_v21  ;;  %949 = vmatmul.mubr.msk.bf16.gmra.mxu1 %vm173_vm0, %v1052_v22 }
  0x43   :  { %324 = vmatprep.mubr.bf16.mxu0 %v1205_v2  ;;  %404 = vmatprep.mubr.bf16.mxu1 %v1205_v2 }
  0x4a   :  { %942 = vmatmul.mubr.msk.bf16.gmra.mxu0 %vm173_vm0, %v1053_v23  ;;  %950 = vmatmul.mubr.msk.bf16.gmra.mxu1 %vm173_vm0, %v1054_v24 }
  0xd2   :  { %v256_v25 = vpop.f32.mrf.mxu0  ;;  %v336_v26 = vpop.f32.mrf.mxu1 }
  0xd3   :  { %v415_v27 = vmul.f32 0.5, %v256_v25  ;;  %v447_v28 = vmul.f32 0.5, %v336_v26 }
  0xd4   :  { %v258_v29 = vpop.f32.mrf.mxu0  ;;  %v338_v30 = vpop.f32.mrf.mxu1 }
  0xd5   :  { %1055 = vtanh.f32 %v415_v27  ;;  %v416_v31 = vmul.f32 0.5, %v258_v29  ;;  %v448_v32 = vmul.f32 0.5, %v338_v30 }
  0xd6   :  { %1057 = vtanh.f32 %v447_v28  ;;  %v260_v33 = vpop.f32.mrf.mxu0  ;;  %v340_v34 = vpop.f32.mrf.mxu1 }
  0xd7   :  { %1059 = vtanh.f32 %v416_v31  ;;  %v417_v35 = vmul.f32 0.5, %v260_v33  ;;  %v449_v36 = vmul.f32 0.5, %v340_v34 }
  0xd8   :  { %1061 = vtanh.f32 %v448_v32  ;;  %v262_v37 = vpop.f32.mrf.mxu0  ;;  %v342_v38 = vpop.f32.mrf.mxu1 }
  0xd9   :  { %1063 = vtanh.f32 %v417_v35  ;;  %v418_v39 = vmul.f32 0.5, %v262_v37  ;;  %v450_v40 = vmul.f32 0.5, %v342_v38 }
  0xda   :  { %1065 = vtanh.f32 %v449_v36  ;;  %v266_v41 = vpop.f32.mrf.mxu0  ;;  %v346_v42 = vpop.f32.mrf.mxu1 }
  0xdb   :  { %1067 = vtanh.f32 %v418_v39  ;;  %v419_v43 = vmul.f32 0.5, %v266_v41  ;;  %v451_v44 = vmul.f32 0.5, %v346_v42 }
  0xdc   :  { %1069 = vtanh.f32 %v450_v40  ;;  %v268_v45 = vpop.f32.mrf.mxu0  ;;  %v348_v46 = vpop.f32.mrf.mxu1 }
  0xdd   :  { %1071 = vtanh.f32 %v419_v43  ;;  %v420_v47 = vmul.f32 0.5, %v268_v45  ;;  %v452_v48 = vmul.f32 0.5, %v348_v46 }
  0xde   :  { %1073 = vtanh.f32 %v451_v44  ;;  %v270_v49 = vpop.f32.mrf.mxu0  ;;  %v350_v50 = vpop.f32.mrf.mxu1 }
  0xdf   :  { %1075 = vtanh.f32 %v420_v47  ;;  %v421_v51 = vmul.f32 0.5, %v270_v49  ;;  %v453_v52 = vmul.f32 0.5, %v350_v50 }
  0xe0   :  { %1077 = vtanh.f32 %v452_v48  ;;  %v272_v53 = vpop.f32.mrf.mxu0  ;;  %v352_v54 = vpop.f32.mrf.mxu1 }
  0xe1   :  { %1079 = vtanh.f32 %v421_v51  ;;  %v422_v55 = vmul.f32 0.5, %v272_v53  ;;  %v454_v56 = vmul.f32 0.5, %v352_v54 }
  0xe2   :  { %v1056_v57 = vpop.eup %1055  ;;  %1081 = vtanh.f32 %v453_v52  ;;  %v276_v58 = vpop.f32.mrf.mxu0 }
  0xe3   :  { %v356_v59 = vpop.f32.mrf.mxu1  ;;  %v1058_v60 = vpop.eup %1057  ;;  %v543_v61 = vmul.f32 0.5, %v1056_v57  ;;  %1083 = vtanh.f32 %v422_v55  ;;  %v423_v62 = vmul.f32 0.5, %v276_v58 }
  0xe4   :  { %v455_v63 = vmul.f32 0.5, %v356_v59  ;;  %v1060_v0 = vpop.eup %1059  ;;  %v575_v1 = vmul.f32 0.5, %v1058_v60  ;;  %1085 = vtanh.f32 %v454_v56  ;;  %v278_v2 = vpop.f32.mrf.mxu0 }
  0xe5   :  { %v358_v3 = vpop.f32.mrf.mxu1  ;;  %v1062_v4 = vpop.eup %1061  ;;  %v607_v5 = vadd.f32 0.5, %v543_v61  ;;  %v544_v6 = vmul.f32 0.5, %v1060_v0  ;;  %1087 = vtanh.f32 %v423_v62  ;;  %v424_v7 = vmul.f32 0.5, %v278_v2 }
  0xe6   :  { %v1064_v8 = vpop.eup %1063  ;;  %v639_v9 = vadd.f32 0.5, %v575_v1  ;;  %v576_v10 = vmul.f32 0.5, %v1062_v4  ;;  %1089 = vtanh.f32 %v455_v63  ;;  %v456_v11 = vmul.f32 0.5, %v358_v3  ;;  %v280_v12 = vpop.f32.mrf.mxu0 }
  0xe7   :  { %v360_v13 = vpop.f32.mrf.mxu1  ;;  %v1066_v14 = vpop.eup %1065  ;;  %v608_v15 = vadd.f32 0.5, %v544_v6  ;;  %v545_v16 = vmul.f32 0.5, %v1064_v8  ;;  %1091 = vtanh.f32 %v424_v7  ;;  %v425_v17 = vmul.f32 0.5, %v280_v12 }
  0xe8   :  { %v1068_v18 = vpop.eup %1067  ;;  %v640_v19 = vadd.f32 0.5, %v576_v10  ;;  %v577_v20 = vmul.f32 0.5, %v1066_v14  ;;  %1093 = vtanh.f32 %v456_v11  ;;  %v457_v21 = vmul.f32 0.5, %v360_v13  ;;  %v282_v22 = vpop.f32.mrf.mxu0 }
  0xe9   :  { %v362_v23 = vpop.f32.mrf.mxu1  ;;  %v1070_v24 = vpop.eup %1069  ;;  %v983_v25 = vpack.c.bf16 %v608_v15, %v607_v5  ;;  %v609_v26 = vadd.f32 0.5, %v545_v16  ;;  %v546_v27 = vmul.f32 0.5, %v1068_v18  ;;  %1095 = vtanh.f32 %v425_v17 }
  0xea   :  { %v1072_v28 = vpop.eup %1071  ;;  %v999_v29 = vpack.c.bf16 %v640_v19, %v639_v9  ;;  %v641_v30 = vadd.f32 0.5, %v577_v20  ;;  %v578_v31 = vmul.f32 0.5, %v1070_v24  ;;  %1097 = vtanh.f32 %v457_v21  ;;  %v286_v32 = vpop.f32.mrf.mxu0 }
  0xeb   :  { %v366_v33 = vpop.f32.mrf.mxu1  ;;  %v1074_v34 = vpop.eup %1073  ;;  %863 = vst [vmem:[#allocation2] sm:$0xff] %v983_v25  ;;  %v610_v35 = vadd.f32 0.5, %v546_v27  ;;  %v547_v36 = vmul.f32 0.5, %v1072_v28  ;;  %v426_v37 = vmul.f32 0.5, %v282_v22  ;;  %v458_v38 = vmul.f32 0.5, %v362_v23 }
  0xec   :  { %v1076_v39 = vpop.eup %1075  ;;  %879 = vst [vmem:[#allocation2 + $0x80] sm:$0xff] %v999_v29  ;;  %v642_v40 = vadd.f32 0.5, %v578_v31  ;;  %v579_v41 = vmul.f32 0.5, %v1074_v34  ;;  %v427_v42 = vmul.f32 0.5, %v286_v32  ;;  %v459_v43 = vmul.f32 0.5, %v366_v33  ;;  %v288_v44 = vpop.f32.mrf.mxu0 }
  0xed   :  { %v368_v45 = vpop.f32.mrf.mxu1  ;;  %v1078_v46 = vpop.eup %1077  ;;  %v984_v47 = vpack.c.bf16 %v610_v35, %v609_v26  ;;  %v611_v48 = vadd.f32 0.5, %v547_v36  ;;  %v548_v49 = vmul.f32 0.5, %v1076_v39  ;;  %1099 = vtanh.f32 %v426_v37 }
  0xee   :  { %v1080_v50 = vpop.eup %1079  ;;  %v1000_v51 = vpack.c.bf16 %v642_v40, %v641_v30  ;;  %v643_v52 = vadd.f32 0.5, %v579_v41  ;;  %v580_v53 = vmul.f32 0.5, %v1078_v46  ;;  %1101 = vtanh.f32 %v458_v38  ;;  %v290_v54 = vpop.f32.mrf.mxu0 }
  0xef   :  { %v370_v55 = vpop.f32.mrf.mxu1  ;;  %v1082_v56 = vpop.eup %1081  ;;  %864 = vst [vmem:[#allocation2 + $0x8] sm:$0xff] %v984_v47  ;;  %v612_v57 = vadd.f32 0.5, %v548_v49  ;;  %v549_v58 = vmul.f32 0.5, %v1080_v50  ;;  %1103 = vtanh.f32 %v427_v42  ;;  %v428_v59 = vmul.f32 0.5, %v288_v44 }
  0xf0   :  { %v1084_v60 = vpop.eup %1083  ;;  %880 = vst [vmem:[#allocation2 + $0x88] sm:$0xff] %v1000_v51  ;;  %v644_v61 = vadd.f32 0.5, %v580_v53  ;;  %v581_v62 = vmul.f32 0.5, %v1082_v56  ;;  %1105 = vtanh.f32 %v459_v43  ;;  %v460_v63 = vmul.f32 0.5, %v368_v45  ;;  %v292_v0 = vpop.f32.mrf.mxu0 }
  0xf1   :  { %v372_v1 = vpop.f32.mrf.mxu1  ;;  %v1086_v2 = vpop.eup %1085  ;;  %v985_v3 = vpack.c.bf16 %v612_v57, %v611_v48  ;;  %v613_v4 = vadd.f32 0.5, %v549_v58  ;;  %v550_v5 = vmul.f32 0.5, %v1084_v60  ;;  %1107 = vtanh.f32 %v428_v59 }
  0xf2   :  { %v1088_v6 = vpop.eup %1087  ;;  %v1001_v7 = vpack.c.bf16 %v644_v61, %v643_v52  ;;  %v645_v8 = vadd.f32 0.5, %v581_v62  ;;  %v582_v9 = vmul.f32 0.5, %v1086_v2  ;;  %1109 = vtanh.f32 %v460_v63  ;;  %v296_v10 = vpop.f32.mrf.mxu0 }
  0xf3   :  { %v376_v11 = vpop.f32.mrf.mxu1  ;;  %v1090_v12 = vpop.eup %1089  ;;  %865 = vst [vmem:[#allocation2 + $0x10] sm:$0xff] %v985_v3  ;;  %v614_v13 = vadd.f32 0.5, %v550_v5  ;;  %v551_v14 = vmul.f32 0.5, %v1088_v6  ;;  %v429_v15 = vmul.f32 0.5, %v290_v54  ;;  %v461_v16 = vmul.f32 0.5, %v370_v55 }
  0xf4   :  { %v1092_v17 = vpop.eup %1091  ;;  %881 = vst [vmem:[#allocation2 + $0x90] sm:$0xff] %v1001_v7  ;;  %v646_v18 = vadd.f32 0.5, %v582_v9  ;;  %v583_v19 = vmul.f32 0.5, %v1090_v12  ;;  %v430_v20 = vmul.f32 0.5, %v292_v0  ;;  %v462_v21 = vmul.f32 0.5, %v372_v1  ;;  %v298_v22 = vpop.f32.mrf.mxu0 }
  0xf5   :  { %v378_v23 = vpop.f32.mrf.mxu1  ;;  %v1094_v24 = vpop.eup %1093  ;;  %v986_v25 = vpack.c.bf16 %v614_v13, %v613_v4  ;;  %v615_v26 = vadd.f32 0.5, %v551_v14  ;;  %v552_v27 = vmul.f32 0.5, %v1092_v17  ;;  %1111 = vtanh.f32 %v429_v15 }
  0xf6   :  { %v1096_v28 = vpop.eup %1095  ;;  %v1002_v29 = vpack.c.bf16 %v646_v18, %v645_v8  ;;  %v647_v30 = vadd.f32 0.5, %v583_v19  ;;  %v584_v31 = vmul.f32 0.5, %v1094_v24  ;;  %1113 = vtanh.f32 %v461_v16  ;;  %v300_v32 = vpop.f32.mrf.mxu0 }
  0xf7   :  { %v380_v33 = vpop.f32.mrf.mxu1  ;;  %v1098_v34 = vpop.eup %1097  ;;  %866 = vst [vmem:[#allocation2 + $0x18] sm:$0xff] %v986_v25  ;;  %v616_v35 = vadd.f32 0.5, %v552_v27  ;;  %v553_v36 = vmul.f32 0.5, %v1096_v28  ;;  %1115 = vtanh.f32 %v430_v20  ;;  %v431_v37 = vmul.f32 0.5, %v296_v10 }
  0xf8   :  { %882 = vst [vmem:[#allocation2 + $0x98] sm:$0xff] %v1002_v29  ;;  %v648_v38 = vadd.f32 0.5, %v584_v31  ;;  %v585_v39 = vmul.f32 0.5, %v1098_v34  ;;  %1117 = vtanh.f32 %v462_v21  ;;  %v463_v40 = vmul.f32 0.5, %v376_v11  ;;  %v302_v41 = vpop.f32.mrf.mxu0 }
  0xf9   :  { %v382_v42 = vpop.f32.mrf.mxu1  ;;  %v987_v43 = vpack.c.bf16 %v616_v35, %v615_v26  ;;  %v617_v44 = vadd.f32 0.5, %v553_v36  ;;  %1119 = vtanh.f32 %v431_v37  ;;  %v432_v45 = vmul.f32 0.5, %v298_v22 }
  0xfa   :  { %v1100_v46 = vpop.eup %1099  ;;  %v1003_v47 = vpack.c.bf16 %v648_v38, %v647_v30  ;;  %v649_v48 = vadd.f32 0.5, %v585_v39  ;;  %1121 = vtanh.f32 %v463_v40  ;;  %v464_v49 = vmul.f32 0.5, %v378_v23  ;;  %v306_v50 = vpop.f32.mrf.mxu0 }
  0xfb   :  { %v386_v51 = vpop.f32.mrf.mxu1  ;;  %v1102_v52 = vpop.eup %1101  ;;  %867 = vst [vmem:[#allocation2 + $0x20] sm:$0xff] %v987_v43  ;;  %v554_v53 = vmul.f32 0.5, %v1100_v46  ;;  %1123 = vtanh.f32 %v432_v45  ;;  %v433_v54 = vmul.f32 0.5, %v300_v32  ;;  %v465_v55 = vmul.f32 0.5, %v380_v33 }
  0xfc   :  { %v1104_v56 = vpop.eup %1103  ;;  %883 = vst [vmem:[#allocation2 + $0xa0] sm:$0xff] %v1003_v47  ;;  %v586_v57 = vmul.f32 0.5, %v1102_v52  ;;  %1125 = vtanh.f32 %v464_v49  ;;  %v434_v58 = vmul.f32 0.5, %v302_v41  ;;  %v466_v59 = vmul.f32 0.5, %v382_v42  ;;  %v308_v60 = vpop.f32.mrf.mxu0 }
  0xfd   :  { %v388_v61 = vpop.f32.mrf.mxu1  ;;  %v1106_v62 = vpop.eup %1105  ;;  %v618_v63 = vadd.f32 0.5, %v554_v53  ;;  %v555_v0 = vmul.f32 0.5, %v1104_v56  ;;  %1127 = vtanh.f32 %v433_v54  ;;  %v435_v1 = vmul.f32 0.5, %v306_v50 }
  0xfe   :  { %v1108_v2 = vpop.eup %1107  ;;  %v650_v3 = vadd.f32 0.5, %v586_v57  ;;  %v587_v4 = vmul.f32 0.5, %v1106_v62  ;;  %1129 = vtanh.f32 %v465_v55  ;;  %v467_v5 = vmul.f32 0.5, %v386_v51  ;;  %v310_v6 = vpop.f32.mrf.mxu0 }
  0xff   :  { %v390_v7 = vpop.f32.mrf.mxu1  ;;  %v1110_v8 = vpop.eup %1109  ;;  %v988_v9 = vpack.c.bf16 %v618_v63, %v617_v44  ;;  %v619_v10 = vadd.f32 0.5, %v555_v0  ;;  %v556_v11 = vmul.f32 0.5, %v1108_v2  ;;  %1131 = vtanh.f32 %v434_v58 }
 0x100   :  { %v1004_v12 = vpack.c.bf16 %v650_v3, %v649_v48  ;;  %v651_v13 = vadd.f32 0.5, %v587_v4  ;;  %v588_v14 = vmul.f32 0.5, %v1110_v8  ;;  %1133 = vtanh.f32 %v466_v59  ;;  %v312_v15 = vpop.f32.mrf.mxu0 }
 0x101   :  { %v392_v16 = vpop.f32.mrf.mxu1  ;;  %868 = vst [vmem:[#allocation2 + $0x28] sm:$0xff] %v988_v9  ;;  %v620_v17 = vadd.f32 0.5, %v556_v11  ;;  %1135 = vtanh.f32 %v435_v1  ;;  %v436_v18 = vmul.f32 0.5, %v308_v60  ;;  %v468_v19 = vmul.f32 0.5, %v388_v61 }
 0x102   :  { %v1112_v20 = vpop.eup %1111  ;;  %884 = vst [vmem:[#allocation2 + $0xa8] sm:$0xff] %v1004_v12  ;;  %v652_v21 = vadd.f32 0.5, %v588_v14  ;;  %1137 = vtanh.f32 %v467_v5  ;;  %v437_v22 = vmul.f32 0.5, %v310_v6  ;;  %v469_v23 = vmul.f32 0.5, %v390_v7  ;;  %v316_v24 = vpop.f32.mrf.mxu0 }
 0x103   :  { %v396_v25 = vpop.f32.mrf.mxu1  ;;  %v1114_v26 = vpop.eup %1113  ;;  %v989_v27 = vpack.c.bf16 %v620_v17, %v619_v10  ;;  %v557_v28 = vmul.f32 0.5, %v1112_v20  ;;  %1139 = vtanh.f32 %v436_v18  ;;  %v438_v29 = vmul.f32 0.5, %v312_v15 }
 0x104   :  { %v1116_v30 = vpop.eup %1115  ;;  %v1005_v31 = vpack.c.bf16 %v652_v21, %v651_v13  ;;  %v589_v32 = vmul.f32 0.5, %v1114_v26  ;;  %1141 = vtanh.f32 %v468_v19  ;;  %v470_v33 = vmul.f32 0.5, %v392_v16  ;;  %v318_v34 = vpop.f32.mrf.mxu0 }
 0x105   :  { %v398_v35 = vpop.f32.mrf.mxu1  ;;  %v1118_v36 = vpop.eup %1117  ;;  %869 = vst [vmem:[#allocation2 + $0x30] sm:$0xff] %v989_v27  ;;  %v621_v37 = vadd.f32 0.5, %v557_v28  ;;  %v558_v38 = vmul.f32 0.5, %v1116_v30  ;;  %1143 = vtanh.f32 %v437_v22  ;;  %v439_v39 = vmul.f32 0.5, %v316_v24 }
 0x106   :  { %v1120_v40 = vpop.eup %1119  ;;  %885 = vst [vmem:[#allocation2 + $0xb0] sm:$0xff] %v1005_v31  ;;  %v653_v41 = vadd.f32 0.5, %v589_v32  ;;  %v590_v42 = vmul.f32 0.5, %v1118_v36  ;;  %1145 = vtanh.f32 %v469_v23  ;;  %v471_v43 = vmul.f32 0.5, %v396_v25  ;;  %v320_v44 = vpop.f32.mrf.mxu0 }
 0x107   :  { %v400_v45 = vpop.f32.mrf.mxu1  ;;  %v1122_v46 = vpop.eup %1121  ;;  %v622_v47 = vadd.f32 0.5, %v558_v38  ;;  %v559_v48 = vmul.f32 0.5, %v1120_v40  ;;  %1147 = vtanh.f32 %v438_v29  ;;  %v440_v49 = vmul.f32 0.5, %v318_v34 }
 0x108   :  { %v1124_v50 = vpop.eup %1123  ;;  %v654_v51 = vadd.f32 0.5, %v590_v42  ;;  %v591_v52 = vmul.f32 0.5, %v1122_v46  ;;  %1149 = vtanh.f32 %v470_v33  ;;  %v472_v53 = vmul.f32 0.5, %v398_v35  ;;  %v322_v54 = vpop.f32.mrf.mxu0 }
 0x109   :  { %v402_v55 = vpop.f32.mrf.mxu1  ;;  %v1126_v56 = vpop.eup %1125  ;;  %v990_v57 = vpack.c.bf16 %v622_v47, %v621_v37  ;;  %v623_v58 = vadd.f32 0.5, %v559_v48  ;;  %v560_v59 = vmul.f32 0.5, %v1124_v50  ;;  %1151 = vtanh.f32 %v439_v39 }
 0x10a   :  { %v1128_v60 = vpop.eup %1127  ;;  %v1006_v61 = vpack.c.bf16 %v654_v51, %v653_v41  ;;  %v655_v62 = vadd.f32 0.5, %v591_v52  ;;  %v592_v63 = vmul.f32 0.5, %v1126_v56  ;;  %1153 = vtanh.f32 %v471_v43  ;;  %v326_v0 = vpop.f32.mrf.mxu0 }
 0x10b   :  { %v406_v1 = vpop.f32.mrf.mxu1  ;;  %v1130_v2 = vpop.eup %1129  ;;  %870 = vst [vmem:[#allocation2 + $0x38] sm:$0xff] %v990_v57  ;;  %v624_v3 = vadd.f32 0.5, %v560_v59  ;;  %v561_v4 = vmul.f32 0.5, %v1128_v60  ;;  %1155 = vtanh.f32 %v440_v49  ;;  %v441_v5 = vmul.f32 0.5, %v320_v44 }
 0x10c   :  { %v1132_v6 = vpop.eup %1131  ;;  %886 = vst [vmem:[#allocation2 + $0xb8] sm:$0xff] %v1006_v61  ;;  %v656_v7 = vadd.f32 0.5, %v592_v63  ;;  %v593_v8 = vmul.f32 0.5, %v1130_v2  ;;  %1157 = vtanh.f32 %v472_v53  ;;  %v473_v9 = vmul.f32 0.5, %v400_v45  ;;  %v328_v14 = vpop.f32.mrf.mxu0 }
 0x10d   :  { %v1134_v10 = vpop.eup %1133  ;;  %v991_v11 = vpack.c.bf16 %v624_v3, %v623_v58  ;;  %v625_v12 = vadd.f32 0.5, %v561_v4  ;;  %v562_v13 = vmul.f32 0.5, %v1132_v6  ;;  %1159 = vtanh.f32 %v441_v5  ;;  %v408_v15 = vpop.f32.mrf.mxu1 }
 0x10e   :  { %v1136_v16 = vpop.eup %1135  ;;  %v1007_v17 = vpack.c.bf16 %v656_v7, %v655_v62  ;;  %v657_v18 = vadd.f32 0.5, %v593_v8  ;;  %v594_v19 = vmul.f32 0.5, %v1134_v10  ;;  %1161 = vtanh.f32 %v473_v9  ;;  %v330_v34 = vpop.f32.mrf.mxu0 }
 0x10f   :  { %v1138_v20 = vpop.eup %1137  ;;  %871 = vst [vmem:[#allocation2 + $0x40] sm:$0xff] %v991_v11  ;;  %v626_v21 = vadd.f32 0.5, %v562_v13  ;;  %v563_v22 = vmul.f32 0.5, %v1136_v16  ;;  %v442_v23 = vmul.f32 0.5, %v322_v54  ;;  %v474_v24 = vmul.f32 0.5, %v402_v55  ;;  %v410_v35 = vpop.f32.mrf.mxu1 }
 0x110   :  { %v1140_v25 = vpop.eup %1139  ;;  %887 = vst [vmem:[#allocation2 + $0xc0] sm:$0xff] %v1007_v17  ;;  %v658_v26 = vadd.f32 0.5, %v594_v19  ;;  %v595_v27 = vmul.f32 0.5, %v1138_v20  ;;  %v443_v28 = vmul.f32 0.5, %v326_v0  ;;  %v475_v29 = vmul.f32 0.5, %v406_v1  ;;  %v332_v52 = vpop.f32.mrf.mxu0 }
 0x111   :  { %v1142_v30 = vpop.eup %1141  ;;  %v992_v31 = vpack.c.bf16 %v626_v21, %v625_v12  ;;  %v627_v32 = vadd.f32 0.5, %v563_v22  ;;  %v564_v33 = vmul.f32 0.5, %v1140_v25  ;;  %1163 = vtanh.f32 %v442_v23  ;;  %v412_v53 = vpop.f32.mrf.mxu1 }
 0x112   :  { %v1144_v36 = vpop.eup %1143  ;;  %v1008_v37 = vpack.c.bf16 %v658_v26, %v657_v18  ;;  %v659_v38 = vadd.f32 0.5, %v595_v27  ;;  %v596_v39 = vmul.f32 0.5, %v1142_v30  ;;  %1165 = vtanh.f32 %v474_v24 }
 0x113   :  { %v1146_v40 = vpop.eup %1145  ;;  %872 = vst [vmem:[#allocation2 + $0x48] sm:$0xff] %v992_v31  ;;  %v628_v41 = vadd.f32 0.5, %v564_v33  ;;  %v565_v42 = vmul.f32 0.5, %v1144_v36  ;;  %1167 = vtanh.f32 %v443_v28  ;;  %v444_v43 = vmul.f32 0.5, %v328_v14 }
 0x114   :  { %v1148_v44 = vpop.eup %1147  ;;  %888 = vst [vmem:[#allocation2 + $0xc8] sm:$0xff] %v1008_v37  ;;  %v660_v45 = vadd.f32 0.5, %v596_v39  ;;  %v597_v46 = vmul.f32 0.5, %v1146_v40  ;;  %1169 = vtanh.f32 %v475_v29  ;;  %v476_v47 = vmul.f32 0.5, %v408_v15 }
 0x115   :  { %v1150_v48 = vpop.eup %1149  ;;  %v993_v49 = vpack.c.bf16 %v628_v41, %v627_v32  ;;  %v629_v50 = vadd.f32 0.5, %v565_v42  ;;  %v566_v51 = vmul.f32 0.5, %v1148_v44  ;;  %1171 = vtanh.f32 %v444_v43 }
 0x116   :  { %v1152_v54 = vpop.eup %1151  ;;  %v1009_v55 = vpack.c.bf16 %v660_v45, %v659_v38  ;;  %v661_v56 = vadd.f32 0.5, %v597_v46  ;;  %v598_v57 = vmul.f32 0.5, %v1150_v48  ;;  %1173 = vtanh.f32 %v476_v47 }
 0x117   :  { %v1154_v58 = vpop.eup %1153  ;;  %873 = vst [vmem:[#allocation2 + $0x50] sm:$0xff] %v993_v49  ;;  %v630_v59 = vadd.f32 0.5, %v566_v51  ;;  %v567_v60 = vmul.f32 0.5, %v1152_v54  ;;  %v445_v61 = vmul.f32 0.5, %v330_v34  ;;  %v477_v62 = vmul.f32 0.5, %v410_v35 }
 0x118   :  { %v1156_v63 = vpop.eup %1155  ;;  %889 = vst [vmem:[#allocation2 + $0xd0] sm:$0xff] %v1009_v55  ;;  %v662_v0 = vadd.f32 0.5, %v598_v57  ;;  %v599_v1 = vmul.f32 0.5, %v1154_v58  ;;  %v446_v2 = vmul.f32 0.5, %v332_v52  ;;  %v478_v3 = vmul.f32 0.5, %v412_v53 }
 0x119   :  { %v1158_v4 = vpop.eup %1157  ;;  %v994_v5 = vpack.c.bf16 %v630_v59, %v629_v50  ;;  %v568_v6 = vmul.f32 0.5, %v1156_v63  ;;  %1175 = vtanh.f32 %v445_v61  ;;  %v631_v11 = vadd.f32 0.5, %v567_v60 }
 0x11a   :  { %v1160_v7 = vpop.eup %1159  ;;  %v1010_v8 = vpack.c.bf16 %v662_v0, %v661_v56  ;;  %v600_v9 = vmul.f32 0.5, %v1158_v4  ;;  %1177 = vtanh.f32 %v477_v62  ;;  %v663_v13 = vadd.f32 0.5, %v599_v1 }
 0x11b   :  { %v1162_v10 = vpop.eup %1161  ;;  %874 = vst [vmem:[#allocation2 + $0x58] sm:$0xff] %v994_v5  ;;  %v632_v12 = vadd.f32 0.5, %v568_v6  ;;  %1179 = vtanh.f32 %v446_v2  ;;  %v569_v16 = vmul.f32 0.5, %v1160_v7 }
 0x11c   :  { %890 = vst [vmem:[#allocation2 + $0xd8] sm:$0xff] %v1010_v8  ;;  %v664_v14 = vadd.f32 0.5, %v600_v9  ;;  %1181 = vtanh.f32 %v478_v3  ;;  %v601_v19 = vmul.f32 0.5, %v1162_v10 }
 0x11d   :  { %v995_v15 = vpack.c.bf16 %v632_v12, %v631_v11  ;;  %v633_v25 = vadd.f32 0.5, %v569_v16 }
 0x11e   :  { %v1164_v17 = vpop.eup %1163  ;;  %v1011_v18 = vpack.c.bf16 %v664_v14, %v663_v13  ;;  %v665_v29 = vadd.f32 0.5, %v601_v19 }
 0x11f   :  { %v1166_v20 = vpop.eup %1165  ;;  %875 = vst [vmem:[#allocation2 + $0x60] sm:$0xff] %v995_v15  ;;  %v570_v21 = vmul.f32 0.5, %v1164_v17 }
 0x120   :  { %v1168_v22 = vpop.eup %1167  ;;  %891 = vst [vmem:[#allocation2 + $0xe0] sm:$0xff] %v1011_v18  ;;  %v602_v23 = vmul.f32 0.5, %v1166_v20 }
 0x121   :  { %v1170_v24 = vpop.eup %1169  ;;  %v634_v26 = vadd.f32 0.5, %v570_v21  ;;  %v571_v27 = vmul.f32 0.5, %v1168_v22 }
 0x122   :  { %v1172_v28 = vpop.eup %1171  ;;  %v666_v30 = vadd.f32 0.5, %v602_v23  ;;  %v603_v31 = vmul.f32 0.5, %v1170_v24 }
 0x123   :  { %v1174_v32 = vpop.eup %1173  ;;  %v996_v33 = vpack.c.bf16 %v634_v26, %v633_v25  ;;  %v572_v34 = vmul.f32 0.5, %v1172_v28  ;;  %v635_v37 = vadd.f32 0.5, %v571_v27 }
 0x124   :  { %v1012_v35 = vpack.c.bf16 %v666_v30, %v665_v29  ;;  %v604_v36 = vmul.f32 0.5, %v1174_v32  ;;  %v667_v40 = vadd.f32 0.5, %v603_v31 }
 0x125   :  { %876 = vst [vmem:[#allocation2 + $0x68] sm:$0xff] %v996_v33  ;;  %v636_v38 = vadd.f32 0.5, %v572_v34 }
 0x126   :  { %v1176_v39 = vpop.eup %1175  ;;  %892 = vst [vmem:[#allocation2 + $0xe8] sm:$0xff] %v1012_v35  ;;  %v668_v41 = vadd.f32 0.5, %v604_v36 }
 0x127   :  { %v1178_v42 = vpop.eup %1177  ;;  %v997_v43 = vpack.c.bf16 %v636_v38, %v635_v37  ;;  %v573_v44 = vmul.f32 0.5, %v1176_v39 }
 0x128   :  { %v1180_v45 = vpop.eup %1179  ;;  %v1013_v46 = vpack.c.bf16 %v668_v41, %v667_v40  ;;  %v605_v47 = vmul.f32 0.5, %v1178_v42 }
 0x129   :  { %v1182_v48 = vpop.eup %1181  ;;  %877 = vst [vmem:[#allocation2 + $0x70] sm:$0xff] %v997_v43  ;;  %v574_v49 = vmul.f32 0.5, %v1180_v45  ;;  %v637_v51 = vadd.f32 0.5, %v573_v44 }
 0x12a   :  { %893 = vst [vmem:[#allocation2 + $0xf0] sm:$0xff] %v1013_v46  ;;  %v606_v50 = vmul.f32 0.5, %v1182_v48  ;;  %v669_v53 = vadd.f32 0.5, %v605_v47 }
 0x12b   :  { %v638_v52 = vadd.f32 0.5, %v574_v49 }
 0x12c   :  { %v670_v54 = vadd.f32 0.5, %v606_v50 }
 0x12d   :  { %v998_v55 = vpack.c.bf16 %v638_v52, %v637_v51 }
 0x12e   :  { %v1014_v56 = vpack.c.bf16 %v670_v54, %v669_v53 }
 0x12f   :  { %878 = vst [vmem:[#allocation2 + $0x78] sm:$0xff] %v998_v55 }
 0x130   :  { %894 = vst [vmem:[#allocation2 + $0xf8] sm:$0xff] %v1014_v56 }
 0x131   :  { %1194 = shalt.err (!%p1191_p4)
}
 0x132   :  { %s1207_s29 = smov 128   ;;  %s1208_s30 = smov 8  }
 0x133   :  { %906 = dma.vmem_to_hbm [thread:$0]  %s901_s28, 4096, %s1333_s2, [#allocation3], %s1207_s29, %s1207_s29, %s1208_s30  }
 0x134   :  { %1203 = dma.done.wait [#allocation3], 4096  }
 0x135   :  { %1204 = vsyncadd [#allocation3], 4294963200 }
 0x136   :  { %910 = vsyncpa [#allocation3], 1 }

</bundles_post_ra>
